<compile_context>
chip_gen: v6e
topology: v6e:2x2x1
jax: 0.10.0
libtpu: 0.0.40
codegen_flags: <defaults>
</compile_context>

<pallas_src>
import functools

import jax
import jax.numpy as jnp
from jax.experimental import pallas as pl
from jax.experimental.pallas import tpu as pltpu


def _clip_embedding_kernel(tile_rows, tok_ref, table_hbm, pos_ref, out_ref,
                           row_buf, copy_sems):
    # tok_ref   : (N,) int32 in SMEM (scalar prefetch) - flattened token ids.
    # table_hbm : (V, D) embedding table, left in HBM (pl.ANY).
    # pos_ref   : (tile_rows, D) VMEM block of per-row position embeddings.
    # out_ref   : (tile_rows, D) VMEM output block.
    # row_buf   : (tile_rows, D) VMEM scratch (DMA landing buffer).
    # copy_sems : (tile_rows,) DMA semaphores.
    base = pl.program_id(0) * tile_rows

    # Issue one row-gather DMA per token (HBM -> VMEM).  tile_rows is a
    # compile-time constant so this unrolls with static destination indices;
    # only the source row (the token id) is dynamic.
    for r in range(tile_rows):
        tok = tok_ref[base + r]
        pltpu.make_async_copy(
            table_hbm.at[pl.ds(tok, 1), :],
            row_buf.at[pl.ds(r, 1), :],
            copy_sems.at[r],
        ).start()

    # Wait for every row DMA (the src ref here only supplies the byte count).
    for r in range(tile_rows):
        pltpu.make_async_copy(
            table_hbm.at[pl.ds(0, 1), :],
            row_buf.at[pl.ds(r, 1), :],
            copy_sems.at[r],
        ).wait()

    # Positional add on the VPU, single contiguous store of the whole tile.
    out_ref[...] = (row_buf[...] + pos_ref[...]).astype(out_ref.dtype)


def clip_embedding(tokens, table, pos, *, tile_rows=None):
    """tokens: (B, T) int; table: (V, D); pos: (T, D).  Returns (B, T, D)."""
    B, T = tokens.shape
    V, D = table.shape
    assert pos.shape == (T, D)

    N = B * T
    if tile_rows is None:
        tile_rows = N if N <= 256 else 128
    assert N % tile_rows == 0, (N, tile_rows)

    tokens_flat = tokens.reshape(N).astype(jnp.int32)
    # One position-embedding row per (batch, token) row so the pos block of a
    # tile matches the gathered rows exactly (cheap XLA-side tile: T*D*B*4 B).
    pos_rows = jnp.tile(pos, (B, 1))                           # (N, D)

    kernel = functools.partial(_clip_embedding_kernel, tile_rows)

    out_flat = pl.pallas_call(
        kernel,
        out_shape=jax.ShapeDtypeStruct((N, D), table.dtype),
        grid_spec=pltpu.PrefetchScalarGridSpec(
            num_scalar_prefetch=1,                             # tokens -> SMEM
            grid=(N // tile_rows,),
            in_specs=[
                # Embedding table stays in HBM; rows are DMA-gathered on
                # demand, so the full (V, D) table never occupies VMEM.
                pl.BlockSpec(memory_space=pl.ANY),
                pl.BlockSpec((tile_rows, D), lambda i, tok: (i, 0)),
            ],
            out_specs=pl.BlockSpec((tile_rows, D), lambda i, tok: (i, 0)),
            scratch_shapes=[
                pltpu.VMEM((tile_rows, D), table.dtype),
                pltpu.SemaphoreType.DMA((tile_rows,)),
            ],
        ),
        compiler_params=pltpu.CompilerParams(
            # Row tiles are independent -> shard across both v7x TensorCores.
            dimension_semantics=("parallel",),
        ),
    )(tokens_flat, table, pos_rows)

    return out_flat.reshape(B, T, D)


if __name__ == "__main__":
    # Small shapes consistent with the module: num_vocab=64, dim_embed=32,
    # num_tokens=8, batch=2.
    B, T, V, D = 2, 8, 64, 32

    key = jax.random.PRNGKey(0)
    k_tok, k_tab, k_pos = jax.random.split(key, 3)

    tokens = jax.random.randint(k_tok, (B, T), 0, V, dtype=jnp.int32)
    # nn.Embedding default init ~ N(0, 1)
    table = jax.random.normal(k_tab, (V, D), dtype=jnp.float32)
    # PyTorch init is torch.zeros((T, D)); use small deterministic random
    # values so the positional-add path is actually exercised.
    pos = 0.01 * jax.random.normal(k_pos, (T, D), dtype=jnp.float32)

    out = clip_embedding(tokens, table, pos)
    out = jax.block_until_ready(out)

    # pure-JAX reference: token_embedding(tokens) + position_embedding
    ref = table[tokens] + pos[None, :, :]

    assert out.shape == (B, T, D), out.shape
    assert out.dtype == jnp.float32
    assert jnp.allclose(out, ref, atol=1e-5, rtol=1e-5), "mismatch vs reference"

    print("KERNEL_OK")
</pallas_src>

<mosaic_0001>
module attributes {stable_mosaic.version = 11 : i64} {
  func.func @_clip_embedding_kernel(%arg0: i32, %arg1: memref<16xi32, #tpu.memory_space<smem>>, %arg2: memref<64x32xf32, #tpu.memory_space<any>>, %arg3: memref<16x32xf32, #tpu.memory_space<vmem>>, %arg4: memref<16x32xf32, #tpu.memory_space<vmem>>, %arg5: memref<16x32xf32, #tpu.memory_space<vmem>>, %arg6: memref<16x!tpu.dma_semaphore, #tpu.memory_space<semaphore_mem>>) attributes {dimension_semantics = [#tpu.dimension_semantics<parallel>], iteration_bounds = array<i64: 1>, scalar_prefetch = 1 : i64, scratch_operands = 2 : i64, tpu.core_type = #tpu.core_type<tc>, window_params = [{}, {transform_indices = @transform_1, window_bounds = array<i64: 16, 32>}, {transform_indices = @transform_2, window_bounds = array<i64: 16, 32>}]} {
    %c16_i32 = arith.constant 16 : i32
    %0 = arith.muli %arg0, %c16_i32 : i32
    %c0_i32 = arith.constant 0 : i32
    %1 = arith.addi %0, %c0_i32 : i32
    %2 = arith.index_cast %1 : i32 to index
    %3 = memref.load %arg1[%2] : memref<16xi32, #tpu.memory_space<smem>>
    %c0_i32_0 = arith.constant 0 : i32
    %c0_i32_1 = arith.constant 0 : i32
    %4 = tpu.memref_slice %arg2[%3, %c0_i32_1] : memref<64x32xf32, #tpu.memory_space<any>> -> memref<1x32xf32, #tpu.memory_space<any>>
    %c0_i32_2 = arith.constant 0 : i32
    %c0_i32_3 = arith.constant 0 : i32
    %5 = tpu.memref_slice %arg5[%c0_i32_2, %c0_i32_3] : memref<16x32xf32, #tpu.memory_space<vmem>> -> memref<1x32xf32, #tpu.memory_space<vmem>>
    %6 = tpu.memref_slice %arg6[%c0_i32_0] : memref<16x!tpu.dma_semaphore, #tpu.memory_space<semaphore_mem>> -> memref<1x!tpu.dma_semaphore, #tpu.memory_space<semaphore_mem>>
    %7 = tpu.memref_squeeze %6 : memref<1x!tpu.dma_semaphore, #tpu.memory_space<semaphore_mem>> -> memref<!tpu.dma_semaphore, #tpu.memory_space<semaphore_mem>>
    tpu.enqueue_dma source(%4 : memref<1x32xf32, #tpu.memory_space<any>>) target(%5 : memref<1x32xf32, #tpu.memory_space<vmem>>) target_semaphore(%7 : memref<!tpu.dma_semaphore, #tpu.memory_space<semaphore_mem>>)
    %c1_i32 = arith.constant 1 : i32
    %8 = arith.addi %0, %c1_i32 : i32
    %9 = arith.index_cast %8 : i32 to index
    %10 = memref.load %arg1[%9] : memref<16xi32, #tpu.memory_space<smem>>
    %c1_i32_4 = arith.constant 1 : i32
    %c0_i32_5 = arith.constant 0 : i32
    %11 = tpu.memref_slice %arg2[%10, %c0_i32_5] : memref<64x32xf32, #tpu.memory_space<any>> -> memref<1x32xf32, #tpu.memory_space<any>>
    %c1_i32_6 = arith.constant 1 : i32
    %c0_i32_7 = arith.constant 0 : i32
    %12 = tpu.memref_slice %arg5[%c1_i32_6, %c0_i32_7] : memref<16x32xf32, #tpu.memory_space<vmem>> -> memref<1x32xf32, #tpu.memory_space<vmem>>
    %13 = tpu.memref_slice %arg6[%c1_i32_4] : memref<16x!tpu.dma_semaphore, #tpu.memory_space<semaphore_mem>> -> memref<1x!tpu.dma_semaphore, #tpu.memory_space<semaphore_mem>>
    %14 = tpu.memref_squeeze %13 : memref<1x!tpu.dma_semaphore, #tpu.memory_space<semaphore_mem>> -> memref<!tpu.dma_semaphore, #tpu.memory_space<semaphore_mem>>
    tpu.enqueue_dma source(%11 : memref<1x32xf32, #tpu.memory_space<any>>) target(%12 : memref<1x32xf32, #tpu.memory_space<vmem>>) target_semaphore(%14 : memref<!tpu.dma_semaphore, #tpu.memory_space<semaphore_mem>>)
    %c2_i32 = arith.constant 2 : i32
    %15 = arith.addi %0, %c2_i32 : i32
    %16 = arith.index_cast %15 : i32 to index
    %17 = memref.load %arg1[%16] : memref<16xi32, #tpu.memory_space<smem>>
    %c2_i32_8 = arith.constant 2 : i32
    %c0_i32_9 = arith.constant 0 : i32
    %18 = tpu.memref_slice %arg2[%17, %c0_i32_9] : memref<64x32xf32, #tpu.memory_space<any>> -> memref<1x32xf32, #tpu.memory_space<any>>
    %c2_i32_10 = arith.constant 2 : i32
    %c0_i32_11 = arith.constant 0 : i32
    %19 = tpu.memref_slice %arg5[%c2_i32_10, %c0_i32_11] : memref<16x32xf32, #tpu.memory_space<vmem>> -> memref<1x32xf32, #tpu.memory_space<vmem>>
    %20 = tpu.memref_slice %arg6[%c2_i32_8] : memref<16x!tpu.dma_semaphore, #tpu.memory_space<semaphore_mem>> -> memref<1x!tpu.dma_semaphore, #tpu.memory_space<semaphore_mem>>
    %21 = tpu.memref_squeeze %20 : memref<1x!tpu.dma_semaphore, #tpu.memory_space<semaphore_mem>> -> memref<!tpu.dma_semaphore, #tpu.memory_space<semaphore_mem>>
    tpu.enqueue_dma source(%18 : memref<1x32xf32, #tpu.memory_space<any>>) target(%19 : memref<1x32xf32, #tpu.memory_space<vmem>>) target_semaphore(%21 : memref<!tpu.dma_semaphore, #tpu.memory_space<semaphore_mem>>)
    %c3_i32 = arith.constant 3 : i32
    %22 = arith.addi %0, %c3_i32 : i32
    %23 = arith.index_cast %22 : i32 to index
    %24 = memref.load %arg1[%23] : memref<16xi32, #tpu.memory_space<smem>>
    %c3_i32_12 = arith.constant 3 : i32
    %c0_i32_13 = arith.constant 0 : i32
    %25 = tpu.memref_slice %arg2[%24, %c0_i32_13] : memref<64x32xf32, #tpu.memory_space<any>> -> memref<1x32xf32, #tpu.memory_space<any>>
    %c3_i32_14 = arith.constant 3 : i32
    %c0_i32_15 = arith.constant 0 : i32
    %26 = tpu.memref_slice %arg5[%c3_i32_14, %c0_i32_15] : memref<16x32xf32, #tpu.memory_space<vmem>> -> memref<1x32xf32, #tpu.memory_space<vmem>>
    %27 = tpu.memref_slice %arg6[%c3_i32_12] : memref<16x!tpu.dma_semaphore, #tpu.memory_space<semaphore_mem>> -> memref<1x!tpu.dma_semaphore, #tpu.memory_space<semaphore_mem>>
    %28 = tpu.memref_squeeze %27 : memref<1x!tpu.dma_semaphore, #tpu.memory_space<semaphore_mem>> -> memref<!tpu.dma_semaphore, #tpu.memory_space<semaphore_mem>>
    tpu.enqueue_dma source(%25 : memref<1x32xf32, #tpu.memory_space<any>>) target(%26 : memref<1x32xf32, #tpu.memory_space<vmem>>) target_semaphore(%28 : memref<!tpu.dma_semaphore, #tpu.memory_space<semaphore_mem>>)
    %c4_i32 = arith.constant 4 : i32
    %29 = arith.addi %0, %c4_i32 : i32
    %30 = arith.index_cast %29 : i32 to index
    %31 = memref.load %arg1[%30] : memref<16xi32, #tpu.memory_space<smem>>
    %c4_i32_16 = arith.constant 4 : i32
    %c0_i32_17 = arith.constant 0 : i32
    %32 = tpu.memref_slice %arg2[%31, %c0_i32_17] : memref<64x32xf32, #tpu.memory_space<any>> -> memref<1x32xf32, #tpu.memory_space<any>>
    %c4_i32_18 = arith.constant 4 : i32
    %c0_i32_19 = arith.constant 0 : i32
    %33 = tpu.memref_slice %arg5[%c4_i32_18, %c0_i32_19] : memref<16x32xf32, #tpu.memory_space<vmem>> -> memref<1x32xf32, #tpu.memory_space<vmem>>
    %34 = tpu.memref_slice %arg6[%c4_i32_16] : memref<16x!tpu.dma_semaphore, #tpu.memory_space<semaphore_mem>> -> memref<1x!tpu.dma_semaphore, #tpu.memory_space<semaphore_mem>>
    %35 = tpu.memref_squeeze %34 : memref<1x!tpu.dma_semaphore, #tpu.memory_space<semaphore_mem>> -> memref<!tpu.dma_semaphore, #tpu.memory_space<semaphore_mem>>
    tpu.enqueue_dma source(%32 : memref<1x32xf32, #tpu.memory_space<any>>) target(%33 : memref<1x32xf32, #tpu.memory_space<vmem>>) target_semaphore(%35 : memref<!tpu.dma_semaphore, #tpu.memory_space<semaphore_mem>>)
    %c5_i32 = arith.constant 5 : i32
    %36 = arith.addi %0, %c5_i32 : i32
    %37 = arith.index_cast %36 : i32 to index
    %38 = memref.load %arg1[%37] : memref<16xi32, #tpu.memory_space<smem>>
    %c5_i32_20 = arith.constant 5 : i32
    %c0_i32_21 = arith.constant 0 : i32
    %39 = tpu.memref_slice %arg2[%38, %c0_i32_21] : memref<64x32xf32, #tpu.memory_space<any>> -> memref<1x32xf32, #tpu.memory_space<any>>
    %c5_i32_22 = arith.constant 5 : i32
    %c0_i32_23 = arith.constant 0 : i32
    %40 = tpu.memref_slice %arg5[%c5_i32_22, %c0_i32_23] : memref<16x32xf32, #tpu.memory_space<vmem>> -> memref<1x32xf32, #tpu.memory_space<vmem>>
    %41 = tpu.memref_slice %arg6[%c5_i32_20] : memref<16x!tpu.dma_semaphore, #tpu.memory_space<semaphore_mem>> -> memref<1x!tpu.dma_semaphore, #tpu.memory_space<semaphore_mem>>
    %42 = tpu.memref_squeeze %41 : memref<1x!tpu.dma_semaphore, #tpu.memory_space<semaphore_mem>> -> memref<!tpu.dma_semaphore, #tpu.memory_space<semaphore_mem>>
    tpu.enqueue_dma source(%39 : memref<1x32xf32, #tpu.memory_space<any>>) target(%40 : memref<1x32xf32, #tpu.memory_space<vmem>>) target_semaphore(%42 : memref<!tpu.dma_semaphore, #tpu.memory_space<semaphore_mem>>)
    %c6_i32 = arith.constant 6 : i32
    %43 = arith.addi %0, %c6_i32 : i32
    %44 = arith.index_cast %43 : i32 to index
    %45 = memref.load %arg1[%44] : memref<16xi32, #tpu.memory_space<smem>>
    %c6_i32_24 = arith.constant 6 : i32
    %c0_i32_25 = arith.constant 0 : i32
    %46 = tpu.memref_slice %arg2[%45, %c0_i32_25] : memref<64x32xf32, #tpu.memory_space<any>> -> memref<1x32xf32, #tpu.memory_space<any>>
    %c6_i32_26 = arith.constant 6 : i32
    %c0_i32_27 = arith.constant 0 : i32
    %47 = tpu.memref_slice %arg5[%c6_i32_26, %c0_i32_27] : memref<16x32xf32, #tpu.memory_space<vmem>> -> memref<1x32xf32, #tpu.memory_space<vmem>>
    %48 = tpu.memref_slice %arg6[%c6_i32_24] : memref<16x!tpu.dma_semaphore, #tpu.memory_space<semaphore_mem>> -> memref<1x!tpu.dma_semaphore, #tpu.memory_space<semaphore_mem>>
    %49 = tpu.memref_squeeze %48 : memref<1x!tpu.dma_semaphore, #tpu.memory_space<semaphore_mem>> -> memref<!tpu.dma_semaphore, #tpu.memory_space<semaphore_mem>>
    tpu.enqueue_dma source(%46 : memref<1x32xf32, #tpu.memory_space<any>>) target(%47 : memref<1x32xf32, #tpu.memory_space<vmem>>) target_semaphore(%49 : memref<!tpu.dma_semaphore, #tpu.memory_space<semaphore_mem>>)
    %c7_i32 = arith.constant 7 : i32
    %50 = arith.addi %0, %c7_i32 : i32
    %51 = arith.index_cast %50 : i32 to index
    %52 = memref.load %arg1[%51] : memref<16xi32, #tpu.memory_space<smem>>
    %c7_i32_28 = arith.constant 7 : i32
    %c0_i32_29 = arith.constant 0 : i32
    %53 = tpu.memref_slice %arg2[%52, %c0_i32_29] : memref<64x32xf32, #tpu.memory_space<any>> -> memref<1x32xf32, #tpu.memory_space<any>>
    %c7_i32_30 = arith.constant 7 : i32
    %c0_i32_31 = arith.constant 0 : i32
    %54 = tpu.memref_slice %arg5[%c7_i32_30, %c0_i32_31] : memref<16x32xf32, #tpu.memory_space<vmem>> -> memref<1x32xf32, #tpu.memory_space<vmem>>
    %55 = tpu.memref_slice %arg6[%c7_i32_28] : memref<16x!tpu.dma_semaphore, #tpu.memory_space<semaphore_mem>> -> memref<1x!tpu.dma_semaphore, #tpu.memory_space<semaphore_mem>>
    %56 = tpu.memref_squeeze %55 : memref<1x!tpu.dma_semaphore, #tpu.memory_space<semaphore_mem>> -> memref<!tpu.dma_semaphore, #tpu.memory_space<semaphore_mem>>
    tpu.enqueue_dma source(%53 : memref<1x32xf32, #tpu.memory_space<any>>) target(%54 : memref<1x32xf32, #tpu.memory_space<vmem>>) target_semaphore(%56 : memref<!tpu.dma_semaphore, #tpu.memory_space<semaphore_mem>>)
    %c8_i32 = arith.constant 8 : i32
    %57 = arith.addi %0, %c8_i32 : i32
    %58 = arith.index_cast %57 : i32 to index
    %59 = memref.load %arg1[%58] : memref<16xi32, #tpu.memory_space<smem>>
    %c8_i32_32 = arith.constant 8 : i32
    %c0_i32_33 = arith.constant 0 : i32
    %60 = tpu.memref_slice %arg2[%59, %c0_i32_33] : memref<64x32xf32, #tpu.memory_space<any>> -> memref<1x32xf32, #tpu.memory_space<any>>
    %c8_i32_34 = arith.constant 8 : i32
    %c0_i32_35 = arith.constant 0 : i32
    %61 = tpu.memref_slice %arg5[%c8_i32_34, %c0_i32_35] : memref<16x32xf32, #tpu.memory_space<vmem>> -> memref<1x32xf32, #tpu.memory_space<vmem>>
    %62 = tpu.memref_slice %arg6[%c8_i32_32] : memref<16x!tpu.dma_semaphore, #tpu.memory_space<semaphore_mem>> -> memref<1x!tpu.dma_semaphore, #tpu.memory_space<semaphore_mem>>
    %63 = tpu.memref_squeeze %62 : memref<1x!tpu.dma_semaphore, #tpu.memory_space<semaphore_mem>> -> memref<!tpu.dma_semaphore, #tpu.memory_space<semaphore_mem>>
    tpu.enqueue_dma source(%60 : memref<1x32xf32, #tpu.memory_space<any>>) target(%61 : memref<1x32xf32, #tpu.memory_space<vmem>>) target_semaphore(%63 : memref<!tpu.dma_semaphore, #tpu.memory_space<semaphore_mem>>)
    %c9_i32 = arith.constant 9 : i32
    %64 = arith.addi %0, %c9_i32 : i32
    %65 = arith.index_cast %64 : i32 to index
    %66 = memref.load %arg1[%65] : memref<16xi32, #tpu.memory_space<smem>>
    %c9_i32_36 = arith.constant 9 : i32
    %c0_i32_37 = arith.constant 0 : i32
    %67 = tpu.memref_slice %arg2[%66, %c0_i32_37] : memref<64x32xf32, #tpu.memory_space<any>> -> memref<1x32xf32, #tpu.memory_space<any>>
    %c9_i32_38 = arith.constant 9 : i32
    %c0_i32_39 = arith.constant 0 : i32
    %68 = tpu.memref_slice %arg5[%c9_i32_38, %c0_i32_39] : memref<16x32xf32, #tpu.memory_space<vmem>> -> memref<1x32xf32, #tpu.memory_space<vmem>>
    %69 = tpu.memref_slice %arg6[%c9_i32_36] : memref<16x!tpu.dma_semaphore, #tpu.memory_space<semaphore_mem>> -> memref<1x!tpu.dma_semaphore, #tpu.memory_space<semaphore_mem>>
    %70 = tpu.memref_squeeze %69 : memref<1x!tpu.dma_semaphore, #tpu.memory_space<semaphore_mem>> -> memref<!tpu.dma_semaphore, #tpu.memory_space<semaphore_mem>>
    tpu.enqueue_dma source(%67 : memref<1x32xf32, #tpu.memory_space<any>>) target(%68 : memref<1x32xf32, #tpu.memory_space<vmem>>) target_semaphore(%70 : memref<!tpu.dma_semaphore, #tpu.memory_space<semaphore_mem>>)
    %c10_i32 = arith.constant 10 : i32
    %71 = arith.addi %0, %c10_i32 : i32
    %72 = arith.index_cast %71 : i32 to index
    %73 = memref.load %arg1[%72] : memref<16xi32, #tpu.memory_space<smem>>
    %c10_i32_40 = arith.constant 10 : i32
    %c0_i32_41 = arith.constant 0 : i32
    %74 = tpu.memref_slice %arg2[%73, %c0_i32_41] : memref<64x32xf32, #tpu.memory_space<any>> -> memref<1x32xf32, #tpu.memory_space<any>>
    %c10_i32_42 = arith.constant 10 : i32
    %c0_i32_43 = arith.constant 0 : i32
    %75 = tpu.memref_slice %arg5[%c10_i32_42, %c0_i32_43] : memref<16x32xf32, #tpu.memory_space<vmem>> -> memref<1x32xf32, #tpu.memory_space<vmem>>
    %76 = tpu.memref_slice %arg6[%c10_i32_40] : memref<16x!tpu.dma_semaphore, #tpu.memory_space<semaphore_mem>> -> memref<1x!tpu.dma_semaphore, #tpu.memory_space<semaphore_mem>>
    %77 = tpu.memref_squeeze %76 : memref<1x!tpu.dma_semaphore, #tpu.memory_space<semaphore_mem>> -> memref<!tpu.dma_semaphore, #tpu.memory_space<semaphore_mem>>
    tpu.enqueue_dma source(%74 : memref<1x32xf32, #tpu.memory_space<any>>) target(%75 : memref<1x32xf32, #tpu.memory_space<vmem>>) target_semaphore(%77 : memref<!tpu.dma_semaphore, #tpu.memory_space<semaphore_mem>>)
    %c11_i32 = arith.constant 11 : i32
    %78 = arith.addi %0, %c11_i32 : i32
    %79 = arith.index_cast %78 : i32 to index
    %80 = memref.load %arg1[%79] : memref<16xi32, #tpu.memory_space<smem>>
    %c11_i32_44 = arith.constant 11 : i32
    %c0_i32_45 = arith.constant 0 : i32
    %81 = tpu.memref_slice %arg2[%80, %c0_i32_45] : memref<64x32xf32, #tpu.memory_space<any>> -> memref<1x32xf32, #tpu.memory_space<any>>
    %c11_i32_46 = arith.constant 11 : i32
    %c0_i32_47 = arith.constant 0 : i32
    %82 = tpu.memref_slice %arg5[%c11_i32_46, %c0_i32_47] : memref<16x32xf32, #tpu.memory_space<vmem>> -> memref<1x32xf32, #tpu.memory_space<vmem>>
    %83 = tpu.memref_slice %arg6[%c11_i32_44] : memref<16x!tpu.dma_semaphore, #tpu.memory_space<semaphore_mem>> -> memref<1x!tpu.dma_semaphore, #tpu.memory_space<semaphore_mem>>
    %84 = tpu.memref_squeeze %83 : memref<1x!tpu.dma_semaphore, #tpu.memory_space<semaphore_mem>> -> memref<!tpu.dma_semaphore, #tpu.memory_space<semaphore_mem>>
    tpu.enqueue_dma source(%81 : memref<1x32xf32, #tpu.memory_space<any>>) target(%82 : memref<1x32xf32, #tpu.memory_space<vmem>>) target_semaphore(%84 : memref<!tpu.dma_semaphore, #tpu.memory_space<semaphore_mem>>)
    %c12_i32 = arith.constant 12 : i32
    %85 = arith.addi %0, %c12_i32 : i32
    %86 = arith.index_cast %85 : i32 to index
    %87 = memref.load %arg1[%86] : memref<16xi32, #tpu.memory_space<smem>>
    %c12_i32_48 = arith.constant 12 : i32
    %c0_i32_49 = arith.constant 0 : i32
    %88 = tpu.memref_slice %arg2[%87, %c0_i32_49] : memref<64x32xf32, #tpu.memory_space<any>> -> memref<1x32xf32, #tpu.memory_space<any>>
    %c12_i32_50 = arith.constant 12 : i32
    %c0_i32_51 = arith.constant 0 : i32
    %89 = tpu.memref_slice %arg5[%c12_i32_50, %c0_i32_51] : memref<16x32xf32, #tpu.memory_space<vmem>> -> memref<1x32xf32, #tpu.memory_space<vmem>>
    %90 = tpu.memref_slice %arg6[%c12_i32_48] : memref<16x!tpu.dma_semaphore, #tpu.memory_space<semaphore_mem>> -> memref<1x!tpu.dma_semaphore, #tpu.memory_space<semaphore_mem>>
    %91 = tpu.memref_squeeze %90 : memref<1x!tpu.dma_semaphore, #tpu.memory_space<semaphore_mem>> -> memref<!tpu.dma_semaphore, #tpu.memory_space<semaphore_mem>>
    tpu.enqueue_dma source(%88 : memref<1x32xf32, #tpu.memory_space<any>>) target(%89 : memref<1x32xf32, #tpu.memory_space<vmem>>) target_semaphore(%91 : memref<!tpu.dma_semaphore, #tpu.memory_space<semaphore_mem>>)
    %c13_i32 = arith.constant 13 : i32
    %92 = arith.addi %0, %c13_i32 : i32
    %93 = arith.index_cast %92 : i32 to index
    %94 = memref.load %arg1[%93] : memref<16xi32, #tpu.memory_space<smem>>
    %c13_i32_52 = arith.constant 13 : i32
    %c0_i32_53 = arith.constant 0 : i32
    %95 = tpu.memref_slice %arg2[%94, %c0_i32_53] : memref<64x32xf32, #tpu.memory_space<any>> -> memref<1x32xf32, #tpu.memory_space<any>>
    %c13_i32_54 = arith.constant 13 : i32
    %c0_i32_55 = arith.constant 0 : i32
    %96 = tpu.memref_slice %arg5[%c13_i32_54, %c0_i32_55] : memref<16x32xf32, #tpu.memory_space<vmem>> -> memref<1x32xf32, #tpu.memory_space<vmem>>
    %97 = tpu.memref_slice %arg6[%c13_i32_52] : memref<16x!tpu.dma_semaphore, #tpu.memory_space<semaphore_mem>> -> memref<1x!tpu.dma_semaphore, #tpu.memory_space<semaphore_mem>>
    %98 = tpu.memref_squeeze %97 : memref<1x!tpu.dma_semaphore, #tpu.memory_space<semaphore_mem>> -> memref<!tpu.dma_semaphore, #tpu.memory_space<semaphore_mem>>
    tpu.enqueue_dma source(%95 : memref<1x32xf32, #tpu.memory_space<any>>) target(%96 : memref<1x32xf32, #tpu.memory_space<vmem>>) target_semaphore(%98 : memref<!tpu.dma_semaphore, #tpu.memory_space<semaphore_mem>>)
    %c14_i32 = arith.constant 14 : i32
    %99 = arith.addi %0, %c14_i32 : i32
    %100 = arith.index_cast %99 : i32 to index
    %101 = memref.load %arg1[%100] : memref<16xi32, #tpu.memory_space<smem>>
    %c14_i32_56 = arith.constant 14 : i32
    %c0_i32_57 = arith.constant 0 : i32
    %102 = tpu.memref_slice %arg2[%101, %c0_i32_57] : memref<64x32xf32, #tpu.memory_space<any>> -> memref<1x32xf32, #tpu.memory_space<any>>
    %c14_i32_58 = arith.constant 14 : i32
    %c0_i32_59 = arith.constant 0 : i32
    %103 = tpu.memref_slice %arg5[%c14_i32_58, %c0_i32_59] : memref<16x32xf32, #tpu.memory_space<vmem>> -> memref<1x32xf32, #tpu.memory_space<vmem>>
    %104 = tpu.memref_slice %arg6[%c14_i32_56] : memref<16x!tpu.dma_semaphore, #tpu.memory_space<semaphore_mem>> -> memref<1x!tpu.dma_semaphore, #tpu.memory_space<semaphore_mem>>
    %105 = tpu.memref_squeeze %104 : memref<1x!tpu.dma_semaphore, #tpu.memory_space<semaphore_mem>> -> memref<!tpu.dma_semaphore, #tpu.memory_space<semaphore_mem>>
    tpu.enqueue_dma source(%102 : memref<1x32xf32, #tpu.memory_space<any>>) target(%103 : memref<1x32xf32, #tpu.memory_space<vmem>>) target_semaphore(%105 : memref<!tpu.dma_semaphore, #tpu.memory_space<semaphore_mem>>)
    %c15_i32 = arith.constant 15 : i32
    %106 = arith.addi %0, %c15_i32 : i32
    %107 = arith.index_cast %106 : i32 to index
    %108 = memref.load %arg1[%107] : memref<16xi32, #tpu.memory_space<smem>>
    %c15_i32_60 = arith.constant 15 : i32
    %c0_i32_61 = arith.constant 0 : i32
    %109 = tpu.memref_slice %arg2[%108, %c0_i32_61] : memref<64x32xf32, #tpu.memory_space<any>> -> memref<1x32xf32, #tpu.memory_space<any>>
    %c15_i32_62 = arith.constant 15 : i32
    %c0_i32_63 = arith.constant 0 : i32
    %110 = tpu.memref_slice %arg5[%c15_i32_62, %c0_i32_63] : memref<16x32xf32, #tpu.memory_space<vmem>> -> memref<1x32xf32, #tpu.memory_space<vmem>>
    %111 = tpu.memref_slice %arg6[%c15_i32_60] : memref<16x!tpu.dma_semaphore, #tpu.memory_space<semaphore_mem>> -> memref<1x!tpu.dma_semaphore, #tpu.memory_space<semaphore_mem>>
    %112 = tpu.memref_squeeze %111 : memref<1x!tpu.dma_semaphore, #tpu.memory_space<semaphore_mem>> -> memref<!tpu.dma_semaphore, #tpu.memory_space<semaphore_mem>>
    tpu.enqueue_dma source(%109 : memref<1x32xf32, #tpu.memory_space<any>>) target(%110 : memref<1x32xf32, #tpu.memory_space<vmem>>) target_semaphore(%112 : memref<!tpu.dma_semaphore, #tpu.memory_space<semaphore_mem>>)
    %c0_i32_64 = arith.constant 0 : i32
    %c0_i32_65 = arith.constant 0 : i32
    %c0_i32_66 = arith.constant 0 : i32
    %113 = tpu.memref_slice %arg2[%c0_i32_65, %c0_i32_66] : memref<64x32xf32, #tpu.memory_space<any>> -> memref<1x32xf32, #tpu.memory_space<any>>
    %c0_i32_67 = arith.constant 0 : i32
    %c0_i32_68 = arith.constant 0 : i32
    %114 = tpu.memref_slice %arg5[%c0_i32_67, %c0_i32_68] : memref<16x32xf32, #tpu.memory_space<vmem>> -> memref<1x32xf32, #tpu.memory_space<vmem>>
    %115 = tpu.memref_slice %arg6[%c0_i32_64] : memref<16x!tpu.dma_semaphore, #tpu.memory_space<semaphore_mem>> -> memref<1x!tpu.dma_semaphore, #tpu.memory_space<semaphore_mem>>
    %116 = tpu.memref_squeeze %115 : memref<1x!tpu.dma_semaphore, #tpu.memory_space<semaphore_mem>> -> memref<!tpu.dma_semaphore, #tpu.memory_space<semaphore_mem>>
    tpu.wait_dma2 semaphore(%116 : memref<!tpu.dma_semaphore, #tpu.memory_space<semaphore_mem>>) src(%113 : memref<1x32xf32, #tpu.memory_space<any>>) dst(%114 : memref<1x32xf32, #tpu.memory_space<vmem>>)
    %c1_i32_69 = arith.constant 1 : i32
    %c0_i32_70 = arith.constant 0 : i32
    %c0_i32_71 = arith.constant 0 : i32
    %117 = tpu.memref_slice %arg2[%c0_i32_70, %c0_i32_71] : memref<64x32xf32, #tpu.memory_space<any>> -> memref<1x32xf32, #tpu.memory_space<any>>
    %c1_i32_72 = arith.constant 1 : i32
    %c0_i32_73 = arith.constant 0 : i32
    %118 = tpu.memref_slice %arg5[%c1_i32_72, %c0_i32_73] : memref<16x32xf32, #tpu.memory_space<vmem>> -> memref<1x32xf32, #tpu.memory_space<vmem>>
    %119 = tpu.memref_slice %arg6[%c1_i32_69] : memref<16x!tpu.dma_semaphore, #tpu.memory_space<semaphore_mem>> -> memref<1x!tpu.dma_semaphore, #tpu.memory_space<semaphore_mem>>
    %120 = tpu.memref_squeeze %119 : memref<1x!tpu.dma_semaphore, #tpu.memory_space<semaphore_mem>> -> memref<!tpu.dma_semaphore, #tpu.memory_space<semaphore_mem>>
    tpu.wait_dma2 semaphore(%120 : memref<!tpu.dma_semaphore, #tpu.memory_space<semaphore_mem>>) src(%117 : memref<1x32xf32, #tpu.memory_space<any>>) dst(%118 : memref<1x32xf32, #tpu.memory_space<vmem>>)
    %c2_i32_74 = arith.constant 2 : i32
    %c0_i32_75 = arith.constant 0 : i32
    %c0_i32_76 = arith.constant 0 : i32
    %121 = tpu.memref_slice %arg2[%c0_i32_75, %c0_i32_76] : memref<64x32xf32, #tpu.memory_space<any>> -> memref<1x32xf32, #tpu.memory_space<any>>
    %c2_i32_77 = arith.constant 2 : i32
    %c0_i32_78 = arith.constant 0 : i32
    %122 = tpu.memref_slice %arg5[%c2_i32_77, %c0_i32_78] : memref<16x32xf32, #tpu.memory_space<vmem>> -> memref<1x32xf32, #tpu.memory_space<vmem>>
    %123 = tpu.memref_slice %arg6[%c2_i32_74] : memref<16x!tpu.dma_semaphore, #tpu.memory_space<semaphore_mem>> -> memref<1x!tpu.dma_semaphore, #tpu.memory_space<semaphore_mem>>
    %124 = tpu.memref_squeeze %123 : memref<1x!tpu.dma_semaphore, #tpu.memory_space<semaphore_mem>> -> memref<!tpu.dma_semaphore, #tpu.memory_space<semaphore_mem>>
    tpu.wait_dma2 semaphore(%124 : memref<!tpu.dma_semaphore, #tpu.memory_space<semaphore_mem>>) src(%121 : memref<1x32xf32, #tpu.memory_space<any>>) dst(%122 : memref<1x32xf32, #tpu.memory_space<vmem>>)
    %c3_i32_79 = arith.constant 3 : i32
    %c0_i32_80 = arith.constant 0 : i32
    %c0_i32_81 = arith.constant 0 : i32
    %125 = tpu.memref_slice %arg2[%c0_i32_80, %c0_i32_81] : memref<64x32xf32, #tpu.memory_space<any>> -> memref<1x32xf32, #tpu.memory_space<any>>
    %c3_i32_82 = arith.constant 3 : i32
    %c0_i32_83 = arith.constant 0 : i32
    %126 = tpu.memref_slice %arg5[%c3_i32_82, %c0_i32_83] : memref<16x32xf32, #tpu.memory_space<vmem>> -> memref<1x32xf32, #tpu.memory_space<vmem>>
    %127 = tpu.memref_slice %arg6[%c3_i32_79] : memref<16x!tpu.dma_semaphore, #tpu.memory_space<semaphore_mem>> -> memref<1x!tpu.dma_semaphore, #tpu.memory_space<semaphore_mem>>
    %128 = tpu.memref_squeeze %127 : memref<1x!tpu.dma_semaphore, #tpu.memory_space<semaphore_mem>> -> memref<!tpu.dma_semaphore, #tpu.memory_space<semaphore_mem>>
    tpu.wait_dma2 semaphore(%128 : memref<!tpu.dma_semaphore, #tpu.memory_space<semaphore_mem>>) src(%125 : memref<1x32xf32, #tpu.memory_space<any>>) dst(%126 : memref<1x32xf32, #tpu.memory_space<vmem>>)
    %c4_i32_84 = arith.constant 4 : i32
    %c0_i32_85 = arith.constant 0 : i32
    %c0_i32_86 = arith.constant 0 : i32
    %129 = tpu.memref_slice %arg2[%c0_i32_85, %c0_i32_86] : memref<64x32xf32, #tpu.memory_space<any>> -> memref<1x32xf32, #tpu.memory_space<any>>
    %c4_i32_87 = arith.constant 4 : i32
    %c0_i32_88 = arith.constant 0 : i32
    %130 = tpu.memref_slice %arg5[%c4_i32_87, %c0_i32_88] : memref<16x32xf32, #tpu.memory_space<vmem>> -> memref<1x32xf32, #tpu.memory_space<vmem>>
    %131 = tpu.memref_slice %arg6[%c4_i32_84] : memref<16x!tpu.dma_semaphore, #tpu.memory_space<semaphore_mem>> -> memref<1x!tpu.dma_semaphore, #tpu.memory_space<semaphore_mem>>
    %132 = tpu.memref_squeeze %131 : memref<1x!tpu.dma_semaphore, #tpu.memory_space<semaphore_mem>> -> memref<!tpu.dma_semaphore, #tpu.memory_space<semaphore_mem>>
    tpu.wait_dma2 semaphore(%132 : memref<!tpu.dma_semaphore, #tpu.memory_space<semaphore_mem>>) src(%129 : memref<1x32xf32, #tpu.memory_space<any>>) dst(%130 : memref<1x32xf32, #tpu.memory_space<vmem>>)
    %c5_i32_89 = arith.constant 5 : i32
    %c0_i32_90 = arith.constant 0 : i32
    %c0_i32_91 = arith.constant 0 : i32
    %133 = tpu.memref_slice %arg2[%c0_i32_90, %c0_i32_91] : memref<64x32xf32, #tpu.memory_space<any>> -> memref<1x32xf32, #tpu.memory_space<any>>
    %c5_i32_92 = arith.constant 5 : i32
    %c0_i32_93 = arith.constant 0 : i32
    %134 = tpu.memref_slice %arg5[%c5_i32_92, %c0_i32_93] : memref<16x32xf32, #tpu.memory_space<vmem>> -> memref<1x32xf32, #tpu.memory_space<vmem>>
    %135 = tpu.memref_slice %arg6[%c5_i32_89] : memref<16x!tpu.dma_semaphore, #tpu.memory_space<semaphore_mem>> -> memref<1x!tpu.dma_semaphore, #tpu.memory_space<semaphore_mem>>
    %136 = tpu.memref_squeeze %135 : memref<1x!tpu.dma_semaphore, #tpu.memory_space<semaphore_mem>> -> memref<!tpu.dma_semaphore, #tpu.memory_space<semaphore_mem>>
    tpu.wait_dma2 semaphore(%136 : memref<!tpu.dma_semaphore, #tpu.memory_space<semaphore_mem>>) src(%133 : memref<1x32xf32, #tpu.memory_space<any>>) dst(%134 : memref<1x32xf32, #tpu.memory_space<vmem>>)
    %c6_i32_94 = arith.constant 6 : i32
    %c0_i32_95 = arith.constant 0 : i32
    %c0_i32_96 = arith.constant 0 : i32
    %137 = tpu.memref_slice %arg2[%c0_i32_95, %c0_i32_96] : memref<64x32xf32, #tpu.memory_space<any>> -> memref<1x32xf32, #tpu.memory_space<any>>
    %c6_i32_97 = arith.constant 6 : i32
    %c0_i32_98 = arith.constant 0 : i32
    %138 = tpu.memref_slice %arg5[%c6_i32_97, %c0_i32_98] : memref<16x32xf32, #tpu.memory_space<vmem>> -> memref<1x32xf32, #tpu.memory_space<vmem>>
    %139 = tpu.memref_slice %arg6[%c6_i32_94] : memref<16x!tpu.dma_semaphore, #tpu.memory_space<semaphore_mem>> -> memref<1x!tpu.dma_semaphore, #tpu.memory_space<semaphore_mem>>
    %140 = tpu.memref_squeeze %139 : memref<1x!tpu.dma_semaphore, #tpu.memory_space<semaphore_mem>> -> memref<!tpu.dma_semaphore, #tpu.memory_space<semaphore_mem>>
    tpu.wait_dma2 semaphore(%140 : memref<!tpu.dma_semaphore, #tpu.memory_space<semaphore_mem>>) src(%137 : memref<1x32xf32, #tpu.memory_space<any>>) dst(%138 : memref<1x32xf32, #tpu.memory_space<vmem>>)
    %c7_i32_99 = arith.constant 7 : i32
    %c0_i32_100 = arith.constant 0 : i32
    %c0_i32_101 = arith.constant 0 : i32
    %141 = tpu.memref_slice %arg2[%c0_i32_100, %c0_i32_101] : memref<64x32xf32, #tpu.memory_space<any>> -> memref<1x32xf32, #tpu.memory_space<any>>
    %c7_i32_102 = arith.constant 7 : i32
    %c0_i32_103 = arith.constant 0 : i32
    %142 = tpu.memref_slice %arg5[%c7_i32_102, %c0_i32_103] : memref<16x32xf32, #tpu.memory_space<vmem>> -> memref<1x32xf32, #tpu.memory_space<vmem>>
    %143 = tpu.memref_slice %arg6[%c7_i32_99] : memref<16x!tpu.dma_semaphore, #tpu.memory_space<semaphore_mem>> -> memref<1x!tpu.dma_semaphore, #tpu.memory_space<semaphore_mem>>
    %144 = tpu.memref_squeeze %143 : memref<1x!tpu.dma_semaphore, #tpu.memory_space<semaphore_mem>> -> memref<!tpu.dma_semaphore, #tpu.memory_space<semaphore_mem>>
    tpu.wait_dma2 semaphore(%144 : memref<!tpu.dma_semaphore, #tpu.memory_space<semaphore_mem>>) src(%141 : memref<1x32xf32, #tpu.memory_space<any>>) dst(%142 : memref<1x32xf32, #tpu.memory_space<vmem>>)
    %c8_i32_104 = arith.constant 8 : i32
    %c0_i32_105 = arith.constant 0 : i32
    %c0_i32_106 = arith.constant 0 : i32
    %145 = tpu.memref_slice %arg2[%c0_i32_105, %c0_i32_106] : memref<64x32xf32, #tpu.memory_space<any>> -> memref<1x32xf32, #tpu.memory_space<any>>
    %c8_i32_107 = arith.constant 8 : i32
    %c0_i32_108 = arith.constant 0 : i32
    %146 = tpu.memref_slice %arg5[%c8_i32_107, %c0_i32_108] : memref<16x32xf32, #tpu.memory_space<vmem>> -> memref<1x32xf32, #tpu.memory_space<vmem>>
    %147 = tpu.memref_slice %arg6[%c8_i32_104] : memref<16x!tpu.dma_semaphore, #tpu.memory_space<semaphore_mem>> -> memref<1x!tpu.dma_semaphore, #tpu.memory_space<semaphore_mem>>
    %148 = tpu.memref_squeeze %147 : memref<1x!tpu.dma_semaphore, #tpu.memory_space<semaphore_mem>> -> memref<!tpu.dma_semaphore, #tpu.memory_space<semaphore_mem>>
    tpu.wait_dma2 semaphore(%148 : memref<!tpu.dma_semaphore, #tpu.memory_space<semaphore_mem>>) src(%145 : memref<1x32xf32, #tpu.memory_space<any>>) dst(%146 : memref<1x32xf32, #tpu.memory_space<vmem>>)
    %c9_i32_109 = arith.constant 9 : i32
    %c0_i32_110 = arith.constant 0 : i32
    %c0_i32_111 = arith.constant 0 : i32
    %149 = tpu.memref_slice %arg2[%c0_i32_110, %c0_i32_111] : memref<64x32xf32, #tpu.memory_space<any>> -> memref<1x32xf32, #tpu.memory_space<any>>
    %c9_i32_112 = arith.constant 9 : i32
    %c0_i32_113 = arith.constant 0 : i32
    %150 = tpu.memref_slice %arg5[%c9_i32_112, %c0_i32_113] : memref<16x32xf32, #tpu.memory_space<vmem>> -> memref<1x32xf32, #tpu.memory_space<vmem>>
    %151 = tpu.memref_slice %arg6[%c9_i32_109] : memref<16x!tpu.dma_semaphore, #tpu.memory_space<semaphore_mem>> -> memref<1x!tpu.dma_semaphore, #tpu.memory_space<semaphore_mem>>
    %152 = tpu.memref_squeeze %151 : memref<1x!tpu.dma_semaphore, #tpu.memory_space<semaphore_mem>> -> memref<!tpu.dma_semaphore, #tpu.memory_space<semaphore_mem>>
    tpu.wait_dma2 semaphore(%152 : memref<!tpu.dma_semaphore, #tpu.memory_space<semaphore_mem>>) src(%149 : memref<1x32xf32, #tpu.memory_space<any>>) dst(%150 : memref<1x32xf32, #tpu.memory_space<vmem>>)
    %c10_i32_114 = arith.constant 10 : i32
    %c0_i32_115 = arith.constant 0 : i32
    %c0_i32_116 = arith.constant 0 : i32
    %153 = tpu.memref_slice %arg2[%c0_i32_115, %c0_i32_116] : memref<64x32xf32, #tpu.memory_space<any>> -> memref<1x32xf32, #tpu.memory_space<any>>
    %c10_i32_117 = arith.constant 10 : i32
    %c0_i32_118 = arith.constant 0 : i32
    %154 = tpu.memref_slice %arg5[%c10_i32_117, %c0_i32_118] : memref<16x32xf32, #tpu.memory_space<vmem>> -> memref<1x32xf32, #tpu.memory_space<vmem>>
    %155 = tpu.memref_slice %arg6[%c10_i32_114] : memref<16x!tpu.dma_semaphore, #tpu.memory_space<semaphore_mem>> -> memref<1x!tpu.dma_semaphore, #tpu.memory_space<semaphore_mem>>
    %156 = tpu.memref_squeeze %155 : memref<1x!tpu.dma_semaphore, #tpu.memory_space<semaphore_mem>> -> memref<!tpu.dma_semaphore, #tpu.memory_space<semaphore_mem>>
    tpu.wait_dma2 semaphore(%156 : memref<!tpu.dma_semaphore, #tpu.memory_space<semaphore_mem>>) src(%153 : memref<1x32xf32, #tpu.memory_space<any>>) dst(%154 : memref<1x32xf32, #tpu.memory_space<vmem>>)
    %c11_i32_119 = arith.constant 11 : i32
    %c0_i32_120 = arith.constant 0 : i32
    %c0_i32_121 = arith.constant 0 : i32
    %157 = tpu.memref_slice %arg2[%c0_i32_120, %c0_i32_121] : memref<64x32xf32, #tpu.memory_space<any>> -> memref<1x32xf32, #tpu.memory_space<any>>
    %c11_i32_122 = arith.constant 11 : i32
    %c0_i32_123 = arith.constant 0 : i32
    %158 = tpu.memref_slice %arg5[%c11_i32_122, %c0_i32_123] : memref<16x32xf32, #tpu.memory_space<vmem>> -> memref<1x32xf32, #tpu.memory_space<vmem>>
    %159 = tpu.memref_slice %arg6[%c11_i32_119] : memref<16x!tpu.dma_semaphore, #tpu.memory_space<semaphore_mem>> -> memref<1x!tpu.dma_semaphore, #tpu.memory_space<semaphore_mem>>
    %160 = tpu.memref_squeeze %159 : memref<1x!tpu.dma_semaphore, #tpu.memory_space<semaphore_mem>> -> memref<!tpu.dma_semaphore, #tpu.memory_space<semaphore_mem>>
    tpu.wait_dma2 semaphore(%160 : memref<!tpu.dma_semaphore, #tpu.memory_space<semaphore_mem>>) src(%157 : memref<1x32xf32, #tpu.memory_space<any>>) dst(%158 : memref<1x32xf32, #tpu.memory_space<vmem>>)
    %c12_i32_124 = arith.constant 12 : i32
    %c0_i32_125 = arith.constant 0 : i32
    %c0_i32_126 = arith.constant 0 : i32
    %161 = tpu.memref_slice %arg2[%c0_i32_125, %c0_i32_126] : memref<64x32xf32, #tpu.memory_space<any>> -> memref<1x32xf32, #tpu.memory_space<any>>
    %c12_i32_127 = arith.constant 12 : i32
    %c0_i32_128 = arith.constant 0 : i32
    %162 = tpu.memref_slice %arg5[%c12_i32_127, %c0_i32_128] : memref<16x32xf32, #tpu.memory_space<vmem>> -> memref<1x32xf32, #tpu.memory_space<vmem>>
    %163 = tpu.memref_slice %arg6[%c12_i32_124] : memref<16x!tpu.dma_semaphore, #tpu.memory_space<semaphore_mem>> -> memref<1x!tpu.dma_semaphore, #tpu.memory_space<semaphore_mem>>
    %164 = tpu.memref_squeeze %163 : memref<1x!tpu.dma_semaphore, #tpu.memory_space<semaphore_mem>> -> memref<!tpu.dma_semaphore, #tpu.memory_space<semaphore_mem>>
    tpu.wait_dma2 semaphore(%164 : memref<!tpu.dma_semaphore, #tpu.memory_space<semaphore_mem>>) src(%161 : memref<1x32xf32, #tpu.memory_space<any>>) dst(%162 : memref<1x32xf32, #tpu.memory_space<vmem>>)
    %c13_i32_129 = arith.constant 13 : i32
    %c0_i32_130 = arith.constant 0 : i32
    %c0_i32_131 = arith.constant 0 : i32
    %165 = tpu.memref_slice %arg2[%c0_i32_130, %c0_i32_131] : memref<64x32xf32, #tpu.memory_space<any>> -> memref<1x32xf32, #tpu.memory_space<any>>
    %c13_i32_132 = arith.constant 13 : i32
    %c0_i32_133 = arith.constant 0 : i32
    %166 = tpu.memref_slice %arg5[%c13_i32_132, %c0_i32_133] : memref<16x32xf32, #tpu.memory_space<vmem>> -> memref<1x32xf32, #tpu.memory_space<vmem>>
    %167 = tpu.memref_slice %arg6[%c13_i32_129] : memref<16x!tpu.dma_semaphore, #tpu.memory_space<semaphore_mem>> -> memref<1x!tpu.dma_semaphore, #tpu.memory_space<semaphore_mem>>
    %168 = tpu.memref_squeeze %167 : memref<1x!tpu.dma_semaphore, #tpu.memory_space<semaphore_mem>> -> memref<!tpu.dma_semaphore, #tpu.memory_space<semaphore_mem>>
    tpu.wait_dma2 semaphore(%168 : memref<!tpu.dma_semaphore, #tpu.memory_space<semaphore_mem>>) src(%165 : memref<1x32xf32, #tpu.memory_space<any>>) dst(%166 : memref<1x32xf32, #tpu.memory_space<vmem>>)
    %c14_i32_134 = arith.constant 14 : i32
    %c0_i32_135 = arith.constant 0 : i32
    %c0_i32_136 = arith.constant 0 : i32
    %169 = tpu.memref_slice %arg2[%c0_i32_135, %c0_i32_136] : memref<64x32xf32, #tpu.memory_space<any>> -> memref<1x32xf32, #tpu.memory_space<any>>
    %c14_i32_137 = arith.constant 14 : i32
    %c0_i32_138 = arith.constant 0 : i32
    %170 = tpu.memref_slice %arg5[%c14_i32_137, %c0_i32_138] : memref<16x32xf32, #tpu.memory_space<vmem>> -> memref<1x32xf32, #tpu.memory_space<vmem>>
    %171 = tpu.memref_slice %arg6[%c14_i32_134] : memref<16x!tpu.dma_semaphore, #tpu.memory_space<semaphore_mem>> -> memref<1x!tpu.dma_semaphore, #tpu.memory_space<semaphore_mem>>
    %172 = tpu.memref_squeeze %171 : memref<1x!tpu.dma_semaphore, #tpu.memory_space<semaphore_mem>> -> memref<!tpu.dma_semaphore, #tpu.memory_space<semaphore_mem>>
    tpu.wait_dma2 semaphore(%172 : memref<!tpu.dma_semaphore, #tpu.memory_space<semaphore_mem>>) src(%169 : memref<1x32xf32, #tpu.memory_space<any>>) dst(%170 : memref<1x32xf32, #tpu.memory_space<vmem>>)
    %c15_i32_139 = arith.constant 15 : i32
    %c0_i32_140 = arith.constant 0 : i32
    %c0_i32_141 = arith.constant 0 : i32
    %173 = tpu.memref_slice %arg2[%c0_i32_140, %c0_i32_141] : memref<64x32xf32, #tpu.memory_space<any>> -> memref<1x32xf32, #tpu.memory_space<any>>
    %c15_i32_142 = arith.constant 15 : i32
    %c0_i32_143 = arith.constant 0 : i32
    %174 = tpu.memref_slice %arg5[%c15_i32_142, %c0_i32_143] : memref<16x32xf32, #tpu.memory_space<vmem>> -> memref<1x32xf32, #tpu.memory_space<vmem>>
    %175 = tpu.memref_slice %arg6[%c15_i32_139] : memref<16x!tpu.dma_semaphore, #tpu.memory_space<semaphore_mem>> -> memref<1x!tpu.dma_semaphore, #tpu.memory_space<semaphore_mem>>
    %176 = tpu.memref_squeeze %175 : memref<1x!tpu.dma_semaphore, #tpu.memory_space<semaphore_mem>> -> memref<!tpu.dma_semaphore, #tpu.memory_space<semaphore_mem>>
    tpu.wait_dma2 semaphore(%176 : memref<!tpu.dma_semaphore, #tpu.memory_space<semaphore_mem>>) src(%173 : memref<1x32xf32, #tpu.memory_space<any>>) dst(%174 : memref<1x32xf32, #tpu.memory_space<vmem>>)
    %c0 = arith.constant 0 : index
    %c0_144 = arith.constant 0 : index
    %177 = vector.load %arg5[%c0, %c0_144] : memref<16x32xf32, #tpu.memory_space<vmem>>, vector<16x32xf32>
    %c0_145 = arith.constant 0 : index
    %c0_146 = arith.constant 0 : index
    %178 = vector.load %arg3[%c0_145, %c0_146] : memref<16x32xf32, #tpu.memory_space<vmem>>, vector<16x32xf32>
    %179 = arith.addf %177, %178 : vector<16x32xf32>
    %c0_147 = arith.constant 0 : index
    %c0_148 = arith.constant 0 : index
    %180 = vector.load %arg4[%c0_147, %c0_148] : memref<16x32xf32, #tpu.memory_space<vmem>>, vector<16x32xf32>
    tpu.vector_store %arg4[%c0_147, %c0_148], %179 {strides = array<i32>} : memref<16x32xf32, #tpu.memory_space<vmem>>, vector<16x32xf32>,
    return
  }
  func.func @transform_1(%arg0: i32, %arg1: memref<16xi32, #tpu.memory_space<smem>>) -> (i32, i32) {
    %c0_i32 = arith.constant 0 : i32
    %c0_i32_0 = arith.constant 0 : i32
    return %arg0, %c0_i32 : i32, i32
  }
  func.func @transform_2(%arg0: i32, %arg1: memref<16xi32, #tpu.memory_space<smem>>) -> (i32, i32) {
    %c0_i32 = arith.constant 0 : i32
    %c0_i32_0 = arith.constant 0 : i32
    return %arg0, %c0_i32 : i32, i32
  }
}

</mosaic_0001>

<bundles_post_ra>
// kernel: tpu_custom_call.1
= control target key start
LH: loop header
LB: loop body
LE: loop exit
PB: predicated region body
PF: predicated region fallthrough
CT: control target
= control target key end

     0   :  { %s1378_s0 = inlined_call_operand.vmem [shape: s32[16], index: 0, kind: input, shape index: {}]   ;;  %s1379_s1 = inlined_call_operand.vmem [shape: f32[64,32], index: 1, kind: input, shape index: {}]   ;;  %s1380_s2 = inlined_call_operand.vmem [shape: f32[16,32], index: 2, kind: input, shape index: {}]   ;;  %s1381_s3 = inlined_call_operand.hbm [shape: f32[16,32], index: 3, kind: output, shape index: {}]  }
   0x1   :  { %s8_s14 = sshll.u32 %s1378_s0, 4  ;;  %s9_s14 = int_to_ptr.vmem [resolvable:$true] %s8_s14 }
   0x2   :  { %s1226_s15 = scalar_lea.vmem %s9_s14, 16  ;;  %p1231_p1 = scmp.lt.s32.totalorder %s9_s14, %s9_s14 }
   0x3   :  { %p1227_p0 = scmp.ne.s32.totalorder %s9_s14, %s1226_s15  ;;  %p1232_p2 = scmp.lt.s32.totalorder %s1226_s15, %s1226_s15 }
   0x5   :  { %p1233_p3 = por %p1232_p2, %p1231_p1 }
   0x7   :  { %p1234_p4 = pnand %p1233_p3, %p1227_p0 }
   0x9   :  { %1237 = shalt.err (!%p1234_p4)  }
   0xa   :  { %s1294_s16 = smov [#allocation5]  }
   0xb   :  { %11 = dma.vmem_to_smem %s9_s14, 16, %s1294_s16, [#allocation4] }
   0xc   :  { %1258 = dma.done.wait [#allocation4], 16 }
   0xd   :  { %1259 = vsyncadd [#allocation4], 4294967280 }
   0xe   :  { %13 = sfence }
   0xf   :  { %14 = vsyncpa [#allocation7], 0  ;;  %s18_s17 = sld [smem:[#allocation5]] }
  0x15   :  { %s19_s20 = scalar_lea.vmem %s1379_s1, %s18_s17 }
  0x16   :  { %v38_v0 = vld [vmem:[%s19_s20] sm:$0x1] }
  0x17   :  { %39 = vst [vmem:[#allocation2] sm:$0x1] %v38_v0 }
  0x18   :  { %65 = vsyncadd [#allocation3], 16  ;;  %s1191_s0 = sld [smem:[#allocation5 + $0x1]] }
  0x1e   :  { %s68_s23 = scalar_lea.vmem %s1379_s1, %s1191_s0 }
  0x1f   :  { %v89_v1 = vld [vmem:[%s68_s23] sm:$0x1] }
  0x20   :  { %90 = vst [vmem:[#allocation2 + $0x1] sm:$0x1] %v89_v1 }
  0x21   :  { %116 = vsyncadd [#allocation3 + $0x1], 16  ;;  %s1192_s24 = sld [smem:[#allocation5 + $0x2]] }
  0x27   :  { %s119_s27 = scalar_lea.vmem %s1379_s1, %s1192_s24 }
  0x28   :  { %v140_v2 = vld [vmem:[%s119_s27] sm:$0x1] }
  0x29   :  { %141 = vst [vmem:[#allocation2 + $0x2] sm:$0x1] %v140_v2 }
  0x2a   :  { %167 = vsyncadd [#allocation3 + $0x2], 16  ;;  %s1193_s28 = sld [smem:[#allocation5 + $0x3]] }
  0x30   :  { %s170_s4 = scalar_lea.vmem %s1379_s1, %s1193_s28 }
  0x31   :  { %v191_v3 = vld [vmem:[%s170_s4] sm:$0x1] }
  0x32   :  { %192 = vst [vmem:[#allocation2 + $0x3] sm:$0x1] %v191_v3 }
  0x33   :  { %218 = vsyncadd [#allocation3 + $0x3], 16  ;;  %s1194_s5 = sld [smem:[#allocation5 + $0x4]] }
  0x39   :  { %s221_s8 = scalar_lea.vmem %s1379_s1, %s1194_s5 }
  0x3a   :  { %v242_v4 = vld [vmem:[%s221_s8] sm:$0x1] }
  0x3b   :  { %243 = vst [vmem:[#allocation2 + $0x4] sm:$0x1] %v242_v4 }
  0x3c   :  { %269 = vsyncadd [#allocation3 + $0x4], 16  ;;  %s1195_s9 = sld [smem:[#allocation5 + $0x5]] }
  0x42   :  { %s272_s12 = scalar_lea.vmem %s1379_s1, %s1195_s9 }
  0x43   :  { %v293_v5 = vld [vmem:[%s272_s12] sm:$0x1] }
  0x44   :  { %294 = vst [vmem:[#allocation2 + $0x5] sm:$0x1] %v293_v5 }
  0x45   :  { %320 = vsyncadd [#allocation3 + $0x5], 16  ;;  %s1196_s13 = sld [smem:[#allocation5 + $0x6]] }
  0x4b   :  { %s323_s16 = scalar_lea.vmem %s1379_s1, %s1196_s13 }
  0x4c   :  { %v344_v6 = vld [vmem:[%s323_s16] sm:$0x1] }
  0x4d   :  { %345 = vst [vmem:[#allocation2 + $0x6] sm:$0x1] %v344_v6 }
  0x4e   :  { %371 = vsyncadd [#allocation3 + $0x6], 16  ;;  %s1197_s17 = sld [smem:[#allocation5 + $0x7]] }
  0x54   :  { %s374_s20 = scalar_lea.vmem %s1379_s1, %s1197_s17 }
  0x55   :  { %v395_v7 = vld [vmem:[%s374_s20] sm:$0x1] }
  0x56   :  { %396 = vst [vmem:[#allocation2 + $0x7] sm:$0x1] %v395_v7 }
  0x57   :  { %422 = vsyncadd [#allocation3 + $0x7], 16  ;;  %s1198_s0 = sld [smem:[#allocation5 + $0x8]] }
  0x5d   :  { %s425_s23 = scalar_lea.vmem %s1379_s1, %s1198_s0 }
  0x5e   :  { %v446_v8 = vld [vmem:[%s425_s23] sm:$0x1] }
  0x5f   :  { %447 = vst [vmem:[#allocation2 + $0x8] sm:$0x1] %v446_v8 }
  0x60   :  { %473 = vsyncadd [#allocation3 + $0x8], 16  ;;  %s1199_s24 = sld [smem:[#allocation5 + $0x9]] }
  0x66   :  { %s476_s27 = scalar_lea.vmem %s1379_s1, %s1199_s24 }
  0x67   :  { %v497_v9 = vld [vmem:[%s476_s27] sm:$0x1] }
  0x68   :  { %498 = vst [vmem:[#allocation2 + $0x9] sm:$0x1] %v497_v9 }
  0x69   :  { %524 = vsyncadd [#allocation3 + $0x9], 16  ;;  %s1200_s28 = sld [smem:[#allocation5 + $0xa]] }
  0x6f   :  { %s527_s4 = scalar_lea.vmem %s1379_s1, %s1200_s28 }
  0x70   :  { %v548_v10 = vld [vmem:[%s527_s4] sm:$0x1] }
  0x71   :  { %549 = vst [vmem:[#allocation2 + $0xa] sm:$0x1] %v548_v10 }
  0x72   :  { %575 = vsyncadd [#allocation3 + $0xa], 16  ;;  %s1201_s5 = sld [smem:[#allocation5 + $0xb]] }
  0x78   :  { %s578_s8 = scalar_lea.vmem %s1379_s1, %s1201_s5 }
  0x79   :  { %v599_v11 = vld [vmem:[%s578_s8] sm:$0x1] }
  0x7a   :  { %600 = vst [vmem:[#allocation2 + $0xb] sm:$0x1] %v599_v11 }
  0x7b   :  { %626 = vsyncadd [#allocation3 + $0xb], 16  ;;  %s1202_s9 = sld [smem:[#allocation5 + $0xc]] }
  0x81   :  { %s629_s12 = scalar_lea.vmem %s1379_s1, %s1202_s9 }
  0x82   :  { %v650_v12 = vld [vmem:[%s629_s12] sm:$0x1] }
  0x83   :  { %651 = vst [vmem:[#allocation2 + $0xc] sm:$0x1] %v650_v12 }
  0x84   :  { %677 = vsyncadd [#allocation3 + $0xc], 16  ;;  %s1203_s13 = sld [smem:[#allocation5 + $0xd]] }
  0x8a   :  { %s680_s16 = scalar_lea.vmem %s1379_s1, %s1203_s13 }
  0x8b   :  { %v701_v13 = vld [vmem:[%s680_s16] sm:$0x1] }
  0x8c   :  { %702 = vst [vmem:[#allocation2 + $0xd] sm:$0x1] %v701_v13 }
  0x8d   :  { %728 = vsyncadd [#allocation3 + $0xd], 16  ;;  %s1204_s17 = sld [smem:[#allocation5 + $0xe]] }
  0x93   :  { %s731_s20 = scalar_lea.vmem %s1379_s1, %s1204_s17 }
  0x94   :  { %v752_v14 = vld [vmem:[%s731_s20] sm:$0x1] }
  0x95   :  { %753 = vst [vmem:[#allocation2 + $0xe] sm:$0x1] %v752_v14 }
  0x96   :  { %779 = vsyncadd [#allocation3 + $0xe], 16  ;;  %s1205_s0 = sld [smem:[#allocation5 + $0xf]] }
  0x9c   :  { %s782_s23 = scalar_lea.vmem %s1379_s1, %s1205_s0 }
  0x9d   :  { %v803_v15 = vld [vmem:[%s782_s23] sm:$0x1] }
  0x9e   :  { %804 = vst [vmem:[#allocation2 + $0xf] sm:$0x1] %v803_v15 }
  0x9f   :  { %830 = vsyncadd [#allocation3 + $0xf], 16 }
  0xa0   :  { %1260 = dma.done.wait [#allocation3], 16 }
  0xa1   :  { %1261 = vsyncadd [#allocation3], 4294967280 }
  0xa2   :  { %1262 = dma.done.wait [#allocation3 + $0x1], 16 }
  0xa3   :  { %1263 = vsyncadd [#allocation3 + $0x1], 4294967280 }
  0xa4   :  { %1264 = dma.done.wait [#allocation3 + $0x2], 16 }
  0xa5   :  { %1265 = vsyncadd [#allocation3 + $0x2], 4294967280 }
  0xa6   :  { %1266 = dma.done.wait [#allocation3 + $0x3], 16 }
  0xa7   :  { %1267 = vsyncadd [#allocation3 + $0x3], 4294967280 }
  0xa8   :  { %1268 = dma.done.wait [#allocation3 + $0x4], 16 }
  0xa9   :  { %1269 = vsyncadd [#allocation3 + $0x4], 4294967280 }
  0xaa   :  { %1270 = dma.done.wait [#allocation3 + $0x5], 16 }
  0xab   :  { %1271 = vsyncadd [#allocation3 + $0x5], 4294967280 }
  0xac   :  { %1272 = dma.done.wait [#allocation3 + $0x6], 16 }
  0xad   :  { %1273 = vsyncadd [#allocation3 + $0x6], 4294967280 }
  0xae   :  { %1274 = dma.done.wait [#allocation3 + $0x7], 16 }
  0xaf   :  { %1275 = vsyncadd [#allocation3 + $0x7], 4294967280 }
  0xb0   :  { %1276 = dma.done.wait [#allocation3 + $0x8], 16 }
  0xb1   :  { %1277 = vsyncadd [#allocation3 + $0x8], 4294967280 }
  0xb2   :  { %1278 = dma.done.wait [#allocation3 + $0x9], 16 }
  0xb3   :  { %1279 = vsyncadd [#allocation3 + $0x9], 4294967280 }
  0xb4   :  { %1280 = dma.done.wait [#allocation3 + $0xa], 16 }
  0xb5   :  { %1281 = vsyncadd [#allocation3 + $0xa], 4294967280 }
  0xb6   :  { %1282 = dma.done.wait [#allocation3 + $0xb], 16 }
  0xb7   :  { %1283 = vsyncadd [#allocation3 + $0xb], 4294967280 }
  0xb8   :  { %1284 = dma.done.wait [#allocation3 + $0xc], 16 }
  0xb9   :  { %1285 = vsyncadd [#allocation3 + $0xc], 4294967280 }
  0xba   :  { %1286 = dma.done.wait [#allocation3 + $0xd], 16 }
  0xbb   :  { %1287 = vsyncadd [#allocation3 + $0xd], 4294967280 }
  0xbc   :  { %1288 = dma.done.wait [#allocation3 + $0xe], 16 }
  0xbd   :  { %1289 = vsyncadd [#allocation3 + $0xe], 4294967280 }
  0xbe   :  { %1290 = dma.done.wait [#allocation3 + $0xf], 16 }
  0xbf   :  { %1291 = vsyncadd [#allocation3 + $0xf], 4294967280  ;;  %s1295_s1 = smov [#allocation6]   ;;  %v864_v16 = vld [vmem:[#allocation2] sm:$0xff]  ;;  %vm870_vm0 = vcmask 261120   ;;  %v865_v18 = vld [vmem:[#allocation2 + $0x8] sm:$0xff] }
  0xc0   :  { %s878_s24 = sshll.u32 %s1295_s1, 4  ;;  %v866_v17 = vld [vmem:[%s1380_s2] sm:$0xff]  ;;  %v867_v20 = vld [vmem:[%s1380_s2 + $0x8] sm:$0xff]  ;;  %s879_s24 = int_to_ptr.vmem [resolvable:$true] %s878_s24 }
  0xc1   :  { %v868_v19 = vadd.f32 %v866_v17, %v864_v16  ;;  %v869_v21 = vadd.f32 %v867_v20, %v865_v18  ;;  %s1238_s29 = scalar_lea.vmem %s879_s24, 256  ;;  %p1243_p6 = scmp.lt.s32.totalorder %s879_s24, %s879_s24 }
  0xc2   :  { %p1239_p5 = scmp.ne.s32.totalorder %s879_s24, %s1238_s29  ;;  %p1244_p7 = scmp.lt.s32.totalorder %s1238_s29, %s1238_s29 }
  0xc3   :  { %871 = vst.msk [vmem:[#allocation6] sm:$0xff] %vm870_vm0, %v868_v19  ;;  %872 = vst.msk [vmem:[#allocation6 + $0x8] sm:$0xff] %vm870_vm0, %v869_v21 }
  0xc4   :  { %p1245_p8 = por %p1244_p7, %p1243_p6 }
  0xc6   :  { %p1246_p9 = pnand %p1245_p8, %p1239_p5 }
  0xc8   :  { %1249 = shalt.err (!%p1246_p9)
}
  0xc9   :  { %s1296_s30 = smov 128   ;;  %s1297_s4 = smov 8  }
  0xca   :  { %884 = dma.vmem_to_hbm [thread:$0]  %s879_s24, 256, %s1381_s3, [#allocation7], %s1296_s30, %s1296_s30, %s1297_s4  }
  0xcb   :  { %1292 = dma.done.wait [#allocation7], 256  }
  0xcc   :  { %1293 = vsyncadd [#allocation7], 4294967040 }
  0xcd   :  { %888 = vsyncpa [#allocation7], 1 }
  0xce   :  { %889 = vsyncmov [#allocation3] }
  0xd1   :  { %s890_s2 = vpop.sfrf %889 }
  0xd2   :  { %p1206_p10 = scmp.ne.s32.totalorder %s890_s2, 0 }
  0xd4   :  { %894 = shalt.err (%p1206_p10)  }
  0xd5   :  { %896 = vsyncmov [#allocation3 + $0x1] }
  0xd8   :  { %s897_s7 = vpop.sfrf %896 }
  0xd9   :  { %p1207_p11 = scmp.ne.s32.totalorder %s897_s7, 0 }
  0xdb   :  { %901 = shalt.err (%p1207_p11)  }
  0xdc   :  { %903 = vsyncmov [#allocation3 + $0x2] }
  0xdf   :  { %s904_s8 = vpop.sfrf %903 }
  0xe0   :  { %p1208_p12 = scmp.ne.s32.totalorder %s904_s8, 0 }
  0xe2   :  { %908 = shalt.err (%p1208_p12)  }
  0xe3   :  { %910 = vsyncmov [#allocation3 + $0x3] }
  0xe6   :  { %s911_s9 = vpop.sfrf %910 }
  0xe7   :  { %p1209_p13 = scmp.ne.s32.totalorder %s911_s9, 0 }
  0xe9   :  { %915 = shalt.err (%p1209_p13)  }
  0xea   :  { %917 = vsyncmov [#allocation3 + $0x4] }
  0xed   :  { %s918_s3 = vpop.sfrf %917 }
  0xee   :  { %p1210_p0 = scmp.ne.s32.totalorder %s918_s3, 0 }
  0xf0   :  { %922 = shalt.err (%p1210_p0)  }
  0xf1   :  { %924 = vsyncmov [#allocation3 + $0x5] }
  0xf4   :  { %s925_s10 = vpop.sfrf %924 }
  0xf5   :  { %p1211_p1 = scmp.ne.s32.totalorder %s925_s10, 0 }
  0xf7   :  { %929 = shalt.err (%p1211_p1)  }
  0xf8   :  { %931 = vsyncmov [#allocation3 + $0x6] }
  0xfb   :  { %s932_s11 = vpop.sfrf %931 }
  0xfc   :  { %p1212_p2 = scmp.ne.s32.totalorder %s932_s11, 0 }
  0xfe   :  { %936 = shalt.err (%p1212_p2)  }
  0xff   :  { %938 = vsyncmov [#allocation3 + $0x7] }
 0x102   :  { %s939_s12 = vpop.sfrf %938 }
 0x103   :  { %p1213_p3 = scmp.ne.s32.totalorder %s939_s12, 0 }
 0x105   :  { %943 = shalt.err (%p1213_p3)  }
 0x106   :  { %945 = vsyncmov [#allocation3 + $0x8] }
 0x109   :  { %s946_s13 = vpop.sfrf %945 }
 0x10a   :  { %p1214_p4 = scmp.ne.s32.totalorder %s946_s13, 0 }
 0x10c   :  { %950 = shalt.err (%p1214_p4)  }
 0x10d   :  { %952 = vsyncmov [#allocation3 + $0x9] }
 0x110   :  { %s953_s14 = vpop.sfrf %952 }
 0x111   :  { %p1215_p5 = scmp.ne.s32.totalorder %s953_s14, 0 }
 0x113   :  { %957 = shalt.err (%p1215_p5)  }
 0x114   :  { %959 = vsyncmov [#allocation3 + $0xa] }
 0x117   :  { %s960_s15 = vpop.sfrf %959 }
 0x118   :  { %p1216_p6 = scmp.ne.s32.totalorder %s960_s15, 0 }
 0x11a   :  { %964 = shalt.err (%p1216_p6)  }
 0x11b   :  { %966 = vsyncmov [#allocation3 + $0xb] }
 0x11e   :  { %s967_s16 = vpop.sfrf %966 }
 0x11f   :  { %p1217_p7 = scmp.ne.s32.totalorder %s967_s16, 0 }
 0x121   :  { %971 = shalt.err (%p1217_p7)  }
 0x122   :  { %973 = vsyncmov [#allocation3 + $0xc] }
 0x125   :  { %s974_s17 = vpop.sfrf %973 }
 0x126   :  { %p1218_p8 = scmp.ne.s32.totalorder %s974_s17, 0 }
 0x128   :  { %978 = shalt.err (%p1218_p8)  }
 0x129   :  { %980 = vsyncmov [#allocation3 + $0xd] }
 0x12c   :  { %s981_s18 = vpop.sfrf %980 }
 0x12d   :  { %p1219_p9 = scmp.ne.s32.totalorder %s981_s18, 0 }
 0x12f   :  { %985 = shalt.err (%p1219_p9)  }
 0x130   :  { %987 = vsyncmov [#allocation3 + $0xe] }
 0x133   :  { %s988_s19 = vpop.sfrf %987 }
 0x134   :  { %p1220_p10 = scmp.ne.s32.totalorder %s988_s19, 0 }
 0x136   :  { %992 = shalt.err (%p1220_p10)  }
 0x137   :  { %994 = vsyncmov [#allocation3 + $0xf] }
 0x13a   :  { %s995_s20 = vpop.sfrf %994 }
 0x13b   :  { %p1221_p11 = scmp.ne.s32.totalorder %s995_s20, 0 }
 0x13d   :  { %999 = shalt.err (%p1221_p11)  }

</bundles_post_ra>
